<compile_context>
chip_gen: v7x
topology: tpu7x:2x2x1
jax: 0.10.0
libtpu: 0.0.40
codegen_flags: <defaults>
</compile_context>

<pallas_src>
import functools

import jax
import jax.numpy as jnp
from jax.experimental import pallas as pl
from jax.experimental.pallas import tpu as pltpu

_LANES = 128


def _smoothl1(x, y):
    # SmoothL1 with beta = 1.0 (PyTorch default):
    #   0.5 * d^2   if |d| < 1
    #   |d| - 0.5   otherwise
    d = x - y
    ad = jnp.abs(d)
    return jnp.where(ad < 1.0, 0.5 * d * d, ad - 0.5)


def _smoothl1_sum_kernel(x_ref, y_ref, o_ref, acc_ref, *,
                         tile_rows, valid_rows, steps_per_slice, need_mask):
    c = pl.program_id(0)   # per-core slice ("parallel" axis)
    i = pl.program_id(1)   # sequential reduction axis within the slice

    @pl.when(i == 0)
    def _init():
        acc_ref[...] = jnp.zeros_like(acc_ref)

    x = x_ref[...].astype(jnp.float32)
    y = y_ref[...].astype(jnp.float32)
    loss = _smoothl1(x, y)

    def lane_partial(v):
        # (tr,128) -> (tr//8, 8, 128) -> VALU tree-add into an (8,128) tile;
        # the cross-sublane / cross-lane reduce is deferred to finalize.
        return v.reshape(-1, 8, _LANES).sum(axis=0)

    if need_mask:
        tile_idx = c * steps_per_slice + i          # LOGICAL tile index
        tile_end = (tile_idx + 1) * tile_rows

        @pl.when(tile_end <= valid_rows)            # fast path: full tile
        def _full():
            acc_ref[...] += lane_partial(loss)

        @pl.when(tile_end > valid_rows)             # ragged / over-provisioned
        def _ragged():
            row_ids = tile_idx * tile_rows + jax.lax.broadcasted_iota(
                jnp.int32, (tile_rows, 1), 0)
            masked = jnp.where(row_ids < valid_rows, loss, 0.0)
            acc_ref[...] += lane_partial(masked)
    else:
        acc_ref[...] += lane_partial(loss)

    @pl.when(i == pl.num_programs(1) - 1)
    def _finalize():
        total = jnp.sum(acc_ref[...], axis=0, keepdims=True)   # (1, 128)
        total = jnp.sum(total, axis=1, keepdims=True)          # (1, 1)
        o_ref[...] = total.reshape(1, 1, 1)


def _tensorcores_per_chip():
    # v5e / v6e ("lite") chips have a single TensorCore; v4 / v5p / v7x have 2.
    try:
        kind = jax.devices()[0].device_kind.lower()
    except Exception:
        return 1
    if "lite" in kind or "v5e" in kind or "v6e" in kind:
        return 1
    return 2


@functools.partial(jax.jit, static_argnames=("tile_rows",))
def loss_pseudo_score(score_map, pseudo_map, *, tile_rows=None):
    """SmoothL1Loss(reduction='mean') over arbitrary (but equal) shapes."""
    assert score_map.shape == pseudo_map.shape
    n = score_map.size

    x = jnp.ravel(score_map)
    y = jnp.ravel(pseudo_map)

    isx = int(jnp.dtype(x.dtype).itemsize)
    isy = int(jnp.dtype(y.dtype).itemsize)
    # Sublane packing multiple: f32 -> 8, bf16 -> 16, 8-bit -> 32 (take stricter).
    sub = max(max(8, 32 // max(isx, 1)), max(8, 32 // max(isy, 1)))

    n_main = (n // _LANES) * _LANES
    rows = n_main // _LANES

    # <=127-element ragged tail handled in plain jnp: avoids padding / copying
    # the whole tensors just to align the last partial lane-row.
    if n_main != n:
        xt = x[n_main:].astype(jnp.float32)
        yt = y[n_main:].astype(jnp.float32)
        tail_sum = jnp.sum(_smoothl1(xt, yt))
    else:
        tail_sum = jnp.float32(0.0)

    if rows == 0:  # tiny input: everything handled by the tail path
        return (tail_sum / jnp.float32(n)).astype(jnp.float32)

    x2 = (x if n_main == n else x[:n_main]).reshape(rows, _LANES)
    y2 = (y if n_main == n else y[:n_main]).reshape(rows, _LANES)

    # ~2 MiB per input block by default; cap so 2 inputs x 2 pipeline buffers
    # stay under ~12 MiB (inside v5e's 16 MiB default scoped VMEM).
    if tile_rows is None:
        tile_rows = (2 * 1024 * 1024) // (_LANES * max(isx, isy))
    vmem_cap_rows = (12 * 1024 * 1024) // (2 * _LANES * (isx + isy))
    tr = max(sub, (min(tile_rows, vmem_cap_rows) // sub) * sub)
    tr = min(tr, ((rows + sub - 1) // sub) * sub)

    n_tiles = -(-rows // tr)  # ceil div
    num_slices = 2 if (n_tiles >= 2 and _tensorcores_per_chip() >= 2) else 1
    steps = -(-n_tiles // num_slices)
    over_provisioned = num_slices * steps > n_tiles
    need_mask = over_provisioned or (rows % tr != 0)

    last_tile = n_tiles - 1
    if over_provisioned:
        # Clamp the DMA block index; the in-kernel mask (driven by the logical
        # tile index) zeroes the contribution of replayed tiles.
        def in_map(c, i):
            return (jnp.minimum(c * steps + i, last_tile), 0)
    else:
        def in_map(c, i):
            return (c * steps + i, 0)

    kernel = functools.partial(
        _smoothl1_sum_kernel,
        tile_rows=tr,
        valid_rows=rows,
        steps_per_slice=steps,
        need_mask=need_mask,
    )

    cost = pl.CostEstimate(
        flops=5 * n_main,
        transcendentals=0,
        bytes_accessed=(isx + isy) * n_main + 4 * num_slices,
    )

    partials = pl.pallas_call(
        kernel,
        out_shape=jax.ShapeDtypeStruct((num_slices, 1, 1), jnp.float32),
        grid_spec=pltpu.PrefetchScalarGridSpec(
            num_scalar_prefetch=0,
            grid=(num_slices, steps),
            in_specs=[
                pl.BlockSpec((tr, _LANES), in_map),
                pl.BlockSpec((tr, _LANES), in_map),
            ],
            out_specs=pl.BlockSpec((1, 1, 1), lambda c, i: (c, 0, 0)),
            scratch_shapes=[pltpu.VMEM((8, _LANES), jnp.float32)],
        ),
        compiler_params=pltpu.CompilerParams(
            dimension_semantics=("parallel", "arbitrary"),
        ),
        cost_estimate=cost,
    )(x2, y2)

    total = jnp.sum(partials) + tail_sum
    return (total / jnp.float32(n)).astype(jnp.float32)


def _reference(score_map, pseudo_map):
    return jnp.mean(_smoothl1(score_map.astype(jnp.float32),
                              pseudo_map.astype(jnp.float32)))


if __name__ == "__main__":
    key = jax.random.PRNGKey(0)
    k1, k2, k3, k4, k5, k6 = jax.random.split(key, 6)

    # 1) Dense NCHW score map / pseudo score map, lane-aligned, default tiling.
    B, C, H, W = 2, 4, 16, 16
    score_map = jax.random.normal(k1, (B, C, H, W), dtype=jnp.float32)
    pseudo_map = jax.random.normal(k2, (B, C, H, W), dtype=jnp.float32)
    out = jax.block_until_ready(loss_pseudo_score(score_map, pseudo_map))
    ref = jax.block_until_ready(_reference(score_map, pseudo_map))
    assert jnp.allclose(out, ref, rtol=1e-5, atol=1e-6), (out, ref)

    # 2) Small forced tile -> odd tile count: exercises the clamped index_map,
    #    over-provisioned-grid masking (on 2-TC chips) and the ragged last
    #    row-tile fast/slow paths.
    a = jax.random.normal(k3, (2, 4, 16, 20), dtype=jnp.float32)
    b = jax.random.normal(k4, (2, 4, 16, 20), dtype=jnp.float32)
    out2 = jax.block_until_ready(loss_pseudo_score(a, b, tile_rows=8))
    ref2 = jax.block_until_ready(_reference(a, b))
    assert jnp.allclose(out2, ref2, rtol=1e-5, atol=1e-6), (out2, ref2)

    # 3) bf16 inputs with a non-multiple-of-128 element count: exercises the
    #    in-kernel dtype promotion, boundary-row mask and the plain-jnp tail.
    c_ = jax.random.normal(k5, (2, 4, 15, 17), dtype=jnp.bfloat16)
    d_ = jax.random.normal(k6, (2, 4, 15, 17), dtype=jnp.bfloat16)
    out3 = jax.block_until_ready(loss_pseudo_score(c_, d_, tile_rows=16))
    ref3 = jax.block_until_ready(_reference(c_, d_))
    assert jnp.allclose(out3, ref3, rtol=1e-4, atol=1e-5), (out3, ref3)

    print("KERNEL_OK")
</pallas_src>

<mosaic_0001>
module attributes {stable_mosaic.version = 11 : i64} {
  func.func @_smoothl1_sum_kernel(%arg0: i32, %arg1: i32, %arg2: memref<16x128xf32, #tpu.memory_space<vmem>>, %arg3: memref<16x128xf32, #tpu.memory_space<vmem>>, %arg4: memref<1x1x1xf32, #tpu.memory_space<vmem>>, %arg5: memref<8x128xf32, #tpu.memory_space<vmem>>) attributes {dimension_semantics = [#tpu.dimension_semantics<parallel>, #tpu.dimension_semantics<arbitrary>], iteration_bounds = array<i64: 1, 1>, scalar_prefetch = 0 : i64, scratch_operands = 1 : i64, tpu.core_type = #tpu.core_type<tc>, window_params = [{transform_indices = @transform_0, window_bounds = array<i64: 16, 128>}, {transform_indices = @transform_1, window_bounds = array<i64: 16, 128>}, {transform_indices = @transform_2, window_bounds = array<i64: 1, 1, 1>}]} {
    %c0_i32 = arith.constant 0 : i32
    %0 = arith.cmpi eq, %arg1, %c0_i32 : i32
    %1 = arith.extui %0 : i1 to i32
    %c0_i32_0 = arith.constant 0 : i32
    %2 = arith.cmpi ne, %1, %c0_i32_0 : i32
    scf.if %2 {
      %cst_13 = arith.constant 0.000000e+00 : f32
      %23 = vector.broadcast %cst_13 : f32 to vector<8x128xf32>
      %c0_14 = arith.constant 0 : index
      %c0_15 = arith.constant 0 : index
      %24 = vector.load %arg5[%c0_14, %c0_15] : memref<8x128xf32, #tpu.memory_space<vmem>>, vector<8x128xf32>
      tpu.vector_store %arg5[%c0_14, %c0_15], %23 {strides = array<i32>} : memref<8x128xf32, #tpu.memory_space<vmem>>, vector<8x128xf32>,
    } else {
    }
    %c0 = arith.constant 0 : index
    %c0_1 = arith.constant 0 : index
    %3 = vector.load %arg2[%c0, %c0_1] : memref<16x128xf32, #tpu.memory_space<vmem>>, vector<16x128xf32>
    %c0_2 = arith.constant 0 : index
    %c0_3 = arith.constant 0 : index
    %4 = vector.load %arg3[%c0_2, %c0_3] : memref<16x128xf32, #tpu.memory_space<vmem>>, vector<16x128xf32>
    %5 = arith.subf %3, %4 : vector<16x128xf32>
    %6 = math.absf %5 : vector<16x128xf32>
    %cst = arith.constant 1.000000e+00 : f32
    %7 = vector.broadcast %cst : f32 to vector<16x128xf32>
    %8 = arith.cmpf olt, %6, %7 : vector<16x128xf32>
    %cst_4 = arith.constant 5.000000e-01 : f32
    %9 = vector.broadcast %cst_4 : f32 to vector<16x128xf32>
    %10 = arith.mulf %9, %5 : vector<16x128xf32>
    %11 = arith.mulf %10, %5 : vector<16x128xf32>
    %cst_5 = arith.constant 5.000000e-01 : f32
    %12 = vector.broadcast %cst_5 : f32 to vector<16x128xf32>
    %13 = arith.subf %6, %12 : vector<16x128xf32>
    %14 = arith.select %8, %11, %13 : vector<16x128xi1>, vector<16x128xf32>
    %c0_6 = arith.constant 0 : index
    %c0_7 = arith.constant 0 : index
    %15 = vector.load %arg5[%c0_6, %c0_7] : memref<8x128xf32, #tpu.memory_space<vmem>>, vector<8x128xf32>
    %16 = vector.shape_cast %14 : vector<16x128xf32> to vector<2x8x128xf32>
    %cst_8 = arith.constant dense<0.000000e+00> : vector<8x128xf32>
    %17 = vector.multi_reduction <add>, %16, %cst_8 [0] : vector<2x8x128xf32> to vector<8x128xf32>
    %18 = arith.addf %15, %17 : vector<8x128xf32>
    %c0_9 = arith.constant 0 : index
    %c0_10 = arith.constant 0 : index
    %19 = vector.load %arg5[%c0_9, %c0_10] : memref<8x128xf32, #tpu.memory_space<vmem>>, vector<8x128xf32>
    tpu.vector_store %arg5[%c0_9, %c0_10], %18 {strides = array<i32>} : memref<8x128xf32, #tpu.memory_space<vmem>>, vector<8x128xf32>,
    %c0_i32_11 = arith.constant 0 : i32
    %20 = arith.cmpi eq, %arg1, %c0_i32_11 : i32
    %21 = arith.extui %20 : i1 to i32
    %c0_i32_12 = arith.constant 0 : i32
    %22 = arith.cmpi ne, %21, %c0_i32_12 : i32
    scf.if %22 {
      %c0_13 = arith.constant 0 : index
      %c0_14 = arith.constant 0 : index
      %23 = vector.load %arg5[%c0_13, %c0_14] : memref<8x128xf32, #tpu.memory_space<vmem>>, vector<8x128xf32>
      %cst_15 = arith.constant dense<0.000000e+00> : vector<128xf32>
      %24 = vector.multi_reduction <add>, %23, %cst_15 [0] : vector<8x128xf32> to vector<128xf32>
      %25 = vector.shape_cast %24 : vector<128xf32> to vector<1x128xf32>
      %cst_16 = arith.constant dense<0.000000e+00> : vector<1xf32>
      %26 = vector.multi_reduction <add>, %25, %cst_16 [1] : vector<1x128xf32> to vector<1xf32>
      %27 = vector.shape_cast %26 : vector<1xf32> to vector<1x1xf32>
      %28 = vector.shape_cast %27 : vector<1x1xf32> to vector<1x1x1xf32>
      %c0_17 = arith.constant 0 : index
      %c0_18 = arith.constant 0 : index
      %c0_19 = arith.constant 0 : index
      %29 = vector.load %arg4[%c0_17, %c0_18, %c0_19] : memref<1x1x1xf32, #tpu.memory_space<vmem>>, vector<1x1x1xf32>
      tpu.vector_store %arg4[%c0_17, %c0_18, %c0_19], %28 {strides = array<i32>} : memref<1x1x1xf32, #tpu.memory_space<vmem>>, vector<1x1x1xf32>,
    } else {
    }
    return
  }
  func.func @transform_0(%arg0: i32, %arg1: i32) -> (i32, i32) {
    %c1_i32 = arith.constant 1 : i32
    %0 = arith.muli %arg0, %c1_i32 : i32
    %1 = arith.addi %0, %arg1 : i32
    %c0_i32 = arith.constant 0 : i32
    %c0_i32_0 = arith.constant 0 : i32
    return %1, %c0_i32 : i32, i32
  }
  func.func @transform_1(%arg0: i32, %arg1: i32) -> (i32, i32) {
    %c1_i32 = arith.constant 1 : i32
    %0 = arith.muli %arg0, %c1_i32 : i32
    %1 = arith.addi %0, %arg1 : i32
    %c0_i32 = arith.constant 0 : i32
    %c0_i32_0 = arith.constant 0 : i32
    return %1, %c0_i32 : i32, i32
  }
  func.func @transform_2(%arg0: i32, %arg1: i32) -> (i32, i32, i32) {
    %c0_i32 = arith.constant 0 : i32
    %c0_i32_0 = arith.constant 0 : i32
    %c0_i32_1 = arith.constant 0 : i32
    return %arg0, %c0_i32, %c0_i32_0 : i32, i32, i32
  }
}

</mosaic_0001>

<bundles_post_ra>
// kernel: loss_pseudo_score.1
= control target key start
LH: loop header
LB: loop body
LE: loop exit
PB: predicated region body
PF: predicated region fallthrough
CT: control target
= control target key end

     0   :  { %s190_s0 = inlined_call_operand.vmem [shape: f32[16,128], index: 0, kind: input, shape index: {}]   ;;  %s191_s1 = inlined_call_operand.vmem [shape: f32[16,128], index: 1, kind: input, shape index: {}]   ;;  %s192_s2 = inlined_call_operand.hbm [shape: f32[1,1,1], index: 2, kind: output, shape index: {}]  }
   0x1   :  { %v61_v0 = vld [vmem:[%s190_s0] sm:$0xff]  ;;  %v62_v1 = vld [vmem:[%s190_s0 + $0x8] sm:$0xff] }
   0x2   :  { %v63_v2 = vld [vmem:[%s191_s1] sm:$0xff]  ;;  %v64_v3 = vld [vmem:[%s191_s1 + $0x8] sm:$0xff] }
   0x3   :  { %v65_v4 = vsub.f32 %v61_v0, %v63_v2 }
   0x4   :  { %7 = vsyncpa [#allocation4], 0  ;;  %v66_v5 = vsub.f32 %v62_v1, %v64_v3  ;;  %s150_s0 = smov [#allocation3]   ;;  %vm95_vm2 = vcmask 0  }
   0x5   :  { %v67_v6 = vand.u32 2147483647, %v65_v4  ;;  %v71_v7 = vmul.f32 0.5, %v65_v4  ;;  %s103_s1 = sshll.u32 %s150_s0, 4  ;;  %s104_s1 = int_to_ptr.vmem [resolvable:$true] %s103_s1 }
   0x6   :  { %v68_v8 = vand.u32 2147483647, %v66_v5  ;;  %v72_v9 = vmul.f32 0.5, %v66_v5  ;;  %s126_s17 = scalar_lea.vmem %s104_s1, 16  ;;  %s130_s18 = scalar_lea.vmem %s104_s1, 32 }
   0x7   :  { %vm69_vm0 = vcmp.lt.f32.partialorder %v67_v6, 1.0  ;;  %v73_v10 = vmul.f32 %v71_v7, %v65_v4  ;;  %v123_v11 = vadd.f32 -0.5, %v67_v6  ;;  %p127_p0 = scmp.ne.s32.totalorder %s104_s1, %s126_s17  ;;  %p131_p1 = scmp.lt.s32.totalorder %s104_s1, %s104_s1 }
   0x8   :  { %vm70_vm1 = vcmp.lt.f32.partialorder %v68_v8, 1.0  ;;  %v74_v12 = vmul.f32 %v72_v9, %v66_v5  ;;  %v124_v13 = vadd.f32 -0.5, %v68_v8  ;;  %p132_p2 = scmp.lt.s32.totalorder %s130_s18, %s126_s17 }
   0x9   :  { %v77_v14 = vsel %vm69_vm0, %v73_v10, %v123_v11 }
   0xa   :  { %v78_v15 = vsel %vm70_vm1, %v74_v12, %v124_v13  ;;  %p133_p3 = por %p132_p2, %p131_p1 }
   0xb   :  { %v80_v16 = vadd.f32 %v78_v15, %v77_v14 }
   0xc   :  { %p134_p4 = pnand %p133_p3, %p127_p0 }
   0xd   :  { %v87_v17 = vrot.slane %v80_v16, 4 }
   0xf   :  { %v88_v18 = vadd.f32 %v87_v17, %v80_v16 }
  0x11   :  { %v89_v19 = vrot.slane %v88_v18, 2 }
  0x13   :  { %v90_v20 = vadd.f32 %v89_v19, %v88_v18 }
  0x15   :  { %v91_v21 = vrot.slane %v90_v20, 1 }
  0x17   :  { %v92_v22 = vadd.f32 %v91_v21, %v90_v20 }
  0x19   :  { %93 = vadd.xlane.f32.xlu0 %v92_v22 }
  0xa6   :  { %v94_v23 = vpop.xlane.xlu0 %93 }
  0xa7   :  { %96 = vst.msk [vmem:[#allocation3] sm:$0x1] %vm95_vm2, %v94_v23 }
  0xa8   :  { %137 = shalt.err (!%p134_p4)
}
  0xa9   :  { %s138_s21 = scalar_lea.hbm %s192_s2, 16 }
  0xaa   :  { %p139_p5 = scmp.ne.s32.totalorder %s192_s2, %s138_s21  ;;  %p142_p6 = scmp.lt.u32.totalorder %s138_s21, %s192_s2 }
  0xac   :  { %p144_p7 = pnand %p142_p6, %p139_p5 }
  0xae   :  { %147 = shalt.err (!%p144_p7)
}
  0xaf   :  { %106 = dma.vmem_to_hbm [thread:$0]  %s104_s1, 16, %s192_s2, [#allocation4]  }
  0xb0   :  { %148 = dma.done.wait [#allocation4], 16  }
  0xb1   :  { %149 = vsyncadd [#allocation4], 4294967280 }
  0xb2   :  { %110 = vsyncpa [#allocation4], 1 }

</bundles_post_ra>
